<compile_context>
chip_gen: v5e
topology: v5e:2x2
jax: 0.10.0
libtpu: 0.0.40
codegen_flags: <defaults>
</compile_context>

<pallas_src>
import jax
import jax.numpy as jnp
from jax.experimental import pallas as pl
from jax.experimental.pallas import tpu as pltpu

INPUT_SIZE = 3
OUTPUT_SIZE = 2

# Batch columns per grid step.  Padded VMEM footprint per block:
# in  [3, 32768] -> [8, 32768] f32 = 1 MiB, out [2, 32768] -> [8, 32768] = 1 MiB,
# double-buffered => ~4 MiB total.  Safe on all generations' default scoped VMEM.
MAX_TILE_B = 32768


def linear_relu_t_kernel(w_ref, b_ref, xt_ref, yt_ref):
    # w_ref : [out_f, in_f] f32 scalars in SMEM
    # b_ref : [out_f]       f32 scalars in SMEM
    # xt_ref: [in_f, TILE_B] f32 in VMEM  (batch on the 128-lane axis)
    # yt_ref: [out_f, TILE_B] in VMEM     (lane-dense, unmasked stores)
    xt = xt_ref[...].astype(jnp.float32)
    out_f = yt_ref.shape[0]
    in_f = xt_ref.shape[0]
    rows = []
    for j in range(out_f):            # out_f = 2: fully unrolled VPU MACs
        acc = xt[0:1, :] * w_ref[j, 0]
        for k in range(1, in_f):      # in_f = 3
            acc = acc + xt[k:k + 1, :] * w_ref[j, k]
        acc = acc + b_ref[j]
        rows.append(jnp.maximum(acc, 0.0))
    yt_ref[...] = jnp.concatenate(rows, axis=0).astype(yt_ref.dtype)


def _pick_tile_b(B):
    if B <= MAX_TILE_B:
        return B  # single block: block dims equal array dims -> always legal
    # Large batch: lane-aligned tile (multiple of 128) and >= 2 grid steps so
    # the "parallel" axis can shard across both v7x TensorCores.
    tile = min(MAX_TILE_B, pl.cdiv(B, 2))
    return max((tile // 128) * 128, 128)


def one_layer_forward(x, w, b):
    """relu(x @ w.T + b) with w in PyTorch nn.Linear layout [out_f, in_f]."""
    B, in_f = x.shape
    out_f = w.shape[0]

    # Layout plumbing: present a lane-dense problem (batch on lanes) to the kernel.
    xt = x.T  # [in_f, B]

    tile_b = _pick_tile_b(B)
    grid = (pl.cdiv(B, tile_b),)

    yt = pl.pallas_call(
        linear_relu_t_kernel,
        out_shape=jax.ShapeDtypeStruct((out_f, B), x.dtype),
        grid=grid,
        in_specs=[
            pl.BlockSpec(memory_space=pltpu.MemorySpace.SMEM),  # w: 6 scalars
            pl.BlockSpec(memory_space=pltpu.MemorySpace.SMEM),  # b: 2 scalars
            pl.BlockSpec((in_f, tile_b), lambda i: (0, i)),     # x^T tiled over batch lanes
        ],
        out_specs=pl.BlockSpec((out_f, tile_b), lambda i: (0, i)),
        compiler_params=pltpu.CompilerParams(
            dimension_semantics=("parallel",),
        ),
    )(w, b, xt)

    return yt.T  # back to [B, out_f] (PyTorch layout)


if __name__ == "__main__":
    key = jax.random.PRNGKey(0)
    kx, kw, kb = jax.random.split(key, 3)

    batch = 256  # small demo batch, multiple of 128 so the lane axis is dense

    # Deterministic parameter init mimicking nn.Linear default (U[-1/sqrt(in), 1/sqrt(in)])
    bound = 1.0 / jnp.sqrt(jnp.float32(INPUT_SIZE))
    w = jax.random.uniform(kw, (OUTPUT_SIZE, INPUT_SIZE), jnp.float32, -bound, bound)
    b = jax.random.uniform(kb, (OUTPUT_SIZE,), jnp.float32, -bound, bound)

    x = jax.random.normal(kx, (batch, INPUT_SIZE), jnp.float32)

    out = one_layer_forward(x, w, b)
    out = jax.block_until_ready(out)

    # Reference check in plain JAX
    ref = jnp.maximum(x @ w.T + b, 0.0)
    assert out.shape == (batch, OUTPUT_SIZE)
    assert jnp.allclose(out, ref, atol=1e-5, rtol=1e-5), "mismatch vs reference"

    print("KERNEL_OK")
</pallas_src>

<mosaic_0001>
module attributes {stable_mosaic.version = 11 : i64} {
  func.func @linear_relu_t_kernel(%arg0: i32, %arg1: memref<2x3xf32, #tpu.memory_space<smem>>, %arg2: memref<2xf32, #tpu.memory_space<smem>>, %arg3: memref<3x256xf32, #tpu.memory_space<vmem>>, %arg4: memref<2x256xf32, #tpu.memory_space<vmem>>) attributes {dimension_semantics = [#tpu.dimension_semantics<parallel>], iteration_bounds = array<i64: 1>, scalar_prefetch = 0 : i64, scratch_operands = 0 : i64, tpu.core_type = #tpu.core_type<tc>, window_params = [{transform_indices = @transform_0, window_bounds = array<i64: 2, 3>}, {transform_indices = @transform_1, window_bounds = array<i64: 2>}, {transform_indices = @transform_2, window_bounds = array<i64: 3, 256>}, {transform_indices = @transform_3, window_bounds = array<i64: 2, 256>}]} {
    %c0 = arith.constant 0 : index
    %c0_0 = arith.constant 0 : index
    %0 = vector.load %arg3[%c0, %c0_0] : memref<3x256xf32, #tpu.memory_space<vmem>>, vector<3x256xf32>
    %1 = vector.extract_strided_slice %0 {offsets = [0, 0], sizes = [1, 256], strides = [1, 1]} : vector<3x256xf32> to vector<1x256xf32>
    %c0_1 = arith.constant 0 : index
    %c0_2 = arith.constant 0 : index
    %2 = memref.load %arg1[%c0_1, %c0_2] : memref<2x3xf32, #tpu.memory_space<smem>>
    %3 = vector.broadcast %2 : f32 to vector<1x256xf32>
    %4 = arith.mulf %1, %3 : vector<1x256xf32>
    %5 = vector.extract_strided_slice %0 {offsets = [1, 0], sizes = [1, 256], strides = [1, 1]} : vector<3x256xf32> to vector<1x256xf32>
    %c0_3 = arith.constant 0 : index
    %c1 = arith.constant 1 : index
    %6 = memref.load %arg1[%c0_3, %c1] : memref<2x3xf32, #tpu.memory_space<smem>>
    %7 = vector.broadcast %6 : f32 to vector<1x256xf32>
    %8 = arith.mulf %5, %7 : vector<1x256xf32>
    %9 = arith.addf %4, %8 : vector<1x256xf32>
    %10 = vector.extract_strided_slice %0 {offsets = [2, 0], sizes = [1, 256], strides = [1, 1]} : vector<3x256xf32> to vector<1x256xf32>
    %c0_4 = arith.constant 0 : index
    %c2 = arith.constant 2 : index
    %11 = memref.load %arg1[%c0_4, %c2] : memref<2x3xf32, #tpu.memory_space<smem>>
    %12 = vector.broadcast %11 : f32 to vector<1x256xf32>
    %13 = arith.mulf %10, %12 : vector<1x256xf32>
    %14 = arith.addf %9, %13 : vector<1x256xf32>
    %c0_5 = arith.constant 0 : index
    %15 = memref.load %arg2[%c0_5] : memref<2xf32, #tpu.memory_space<smem>>
    %16 = vector.broadcast %15 : f32 to vector<1x256xf32>
    %17 = arith.addf %14, %16 : vector<1x256xf32>
    %cst = arith.constant 0.000000e+00 : f32
    %18 = vector.broadcast %cst : f32 to vector<1x256xf32>
    %19 = arith.maximumf %17, %18 : vector<1x256xf32>
    %20 = vector.extract_strided_slice %0 {offsets = [0, 0], sizes = [1, 256], strides = [1, 1]} : vector<3x256xf32> to vector<1x256xf32>
    %c1_6 = arith.constant 1 : index
    %c0_7 = arith.constant 0 : index
    %21 = memref.load %arg1[%c1_6, %c0_7] : memref<2x3xf32, #tpu.memory_space<smem>>
    %22 = vector.broadcast %21 : f32 to vector<1x256xf32>
    %23 = arith.mulf %20, %22 : vector<1x256xf32>
    %24 = vector.extract_strided_slice %0 {offsets = [1, 0], sizes = [1, 256], strides = [1, 1]} : vector<3x256xf32> to vector<1x256xf32>
    %c1_8 = arith.constant 1 : index
    %c1_9 = arith.constant 1 : index
    %25 = memref.load %arg1[%c1_8, %c1_9] : memref<2x3xf32, #tpu.memory_space<smem>>
    %26 = vector.broadcast %25 : f32 to vector<1x256xf32>
    %27 = arith.mulf %24, %26 : vector<1x256xf32>
    %28 = arith.addf %23, %27 : vector<1x256xf32>
    %29 = vector.extract_strided_slice %0 {offsets = [2, 0], sizes = [1, 256], strides = [1, 1]} : vector<3x256xf32> to vector<1x256xf32>
    %c1_10 = arith.constant 1 : index
    %c2_11 = arith.constant 2 : index
    %30 = memref.load %arg1[%c1_10, %c2_11] : memref<2x3xf32, #tpu.memory_space<smem>>
    %31 = vector.broadcast %30 : f32 to vector<1x256xf32>
    %32 = arith.mulf %29, %31 : vector<1x256xf32>
    %33 = arith.addf %28, %32 : vector<1x256xf32>
    %c1_12 = arith.constant 1 : index
    %34 = memref.load %arg2[%c1_12] : memref<2xf32, #tpu.memory_space<smem>>
    %35 = vector.broadcast %34 : f32 to vector<1x256xf32>
    %36 = arith.addf %33, %35 : vector<1x256xf32>
    %cst_13 = arith.constant 0.000000e+00 : f32
    %37 = vector.broadcast %cst_13 : f32 to vector<1x256xf32>
    %38 = arith.maximumf %36, %37 : vector<1x256xf32>
    %39 = tpu.concatenate %19, %38 in 0 : vector<1x256xf32>, vector<1x256xf32> -> vector<2x256xf32>
    %c0_14 = arith.constant 0 : index
    %c0_15 = arith.constant 0 : index
    %40 = vector.load %arg4[%c0_14, %c0_15] : memref<2x256xf32, #tpu.memory_space<vmem>>, vector<2x256xf32>
    tpu.vector_store %arg4[%c0_14, %c0_15], %39 {strides = array<i32>} : memref<2x256xf32, #tpu.memory_space<vmem>>, vector<2x256xf32>,
    return
  }
  func.func @transform_0(%arg0: i32) -> (i32, i32) {
    %c0_i32 = arith.constant 0 : i32
    %c0_i32_0 = arith.constant 0 : i32
    %c0_i32_1 = arith.constant 0 : i32
    return %c0_i32, %c0_i32_0 : i32, i32
  }
  func.func @transform_1(%arg0: i32) -> i32 {
    %c0_i32 = arith.constant 0 : i32
    %c0_i32_0 = arith.constant 0 : i32
    return %c0_i32 : i32
  }
  func.func @transform_2(%arg0: i32) -> (i32, i32) {
    %c0_i32 = arith.constant 0 : i32
    %c0_i32_0 = arith.constant 0 : i32
    return %c0_i32, %arg0 : i32, i32
  }
  func.func @transform_3(%arg0: i32) -> (i32, i32) {
    %c0_i32 = arith.constant 0 : i32
    %c0_i32_0 = arith.constant 0 : i32
    return %c0_i32, %arg0 : i32, i32
  }
}

</mosaic_0001>

<bundles_post_ra>
// kernel: tpu_custom_call.1
= control target key start
LH: loop header
LB: loop body
LE: loop exit
PB: predicated region body
PF: predicated region fallthrough
CT: control target
= control target key end

     0   :  { %8 = vsyncpa [#allocation5], 0  ;;  %s270_s0 = inlined_call_operand.hbm [shape: f32[2,3], index: 0, kind: input, shape index: {}]   ;;  %s271_s1 = inlined_call_operand.hbm [shape: f32[2], index: 1, kind: input, shape index: {}]   ;;  %s272_s2 = inlined_call_operand.hbm [shape: f32[3,256], index: 2, kind: input, shape index: {}]   ;;  %s273_s3 = inlined_call_operand.hbm [shape: f32[2,256], index: 3, kind: output, shape index: {}]  }
   0x1   :  { %9 = vsyncpa [#allocation7], 0 }
   0x2   :  { %10 = vsyncpa [#allocation3], 0 }
   0x3   :  { %11 = vsyncpa [#allocation4], 0  ;;  %s17_s14 = sshll.u32 %s270_s0, 4  ;;  %s26_s17 = sshll.u32 %s271_s1, 4  ;;  %s18_s14 = int_to_ptr.hbm [resolvable:$true] %s17_s14  ;;  %s27_s17 = int_to_ptr.hbm [resolvable:$true] %s26_s17 }
   0x4   :  { %s234_s18 = smov [#allocation2]   ;;  %s235_s19 = smov [#allocation6]  }
   0x5   :  { %20 = dma.hbm_to_smem %s18_s14, 32, %s234_s18, [#allocation5]  }
   0x6   :  { %29 = dma.hbm_to_smem %s27_s17, 16, %s235_s19, [#allocation7]  }
   0x7   :  { %s35_s22 = sshll.u32 %s272_s2, 4  ;;  %s236_s23 = smov [#allocation8]   ;;  %s36_s22 = int_to_ptr.hbm [resolvable:$true] %s35_s22 }
   0x8   :  { %s37_s24 = sshll.u32 %s236_s23, 4  ;;  %s38_s24 = int_to_ptr.vmem [resolvable:$true] %s37_s24 }
   0x9   :  { %40 = dma.hbm_to_vmem [thread:$0]  %s36_s22, 128, %s38_s24, [#allocation3]  }
   0xa   :  { %226 = dma.done.wait [#allocation5], 32  }
   0xb   :  { %227 = vsyncadd [#allocation5], 4294967264 }
   0xc   :  { %228 = dma.done.wait [#allocation7], 16  }
   0xd   :  { %229 = vsyncadd [#allocation7], 4294967280 }
   0xe   :  { %230 = dma.done.wait [#allocation3], 128  }
   0xf   :  { %231 = vsyncadd [#allocation3], 4294967168 }
  0x10   :  { %53 = sfence }
  0x11   :  { %s55_s0 = sld [smem:[#allocation2]]  ;;  %v54_v0 = vld [vmem:[#allocation8] sm:$0x77]  ;;  %vm111_vm0 = vcmask 1040384   ;;  %s237_s30 = smov [#allocation9]   ;;  %vm117_vm1 = vcmask 1041408  }
  0x12   :  { %s140_s1 = sld [smem:[#allocation2 + $0x1]]  ;;  %s126_s4 = sshll.u32 %s237_s30, 4  ;;  %s127_s4 = int_to_ptr.vmem [resolvable:$true] %s126_s4 }
  0x13   :  { %s142_s25 = sld [smem:[#allocation2 + $0x2]]  ;;  %s128_s7 = sshll.u32 %s273_s3, 4  ;;  %s129_s7 = int_to_ptr.hbm [resolvable:$true] %s128_s7 }
  0x14   :  { %s74_s26 = sld [smem:[#allocation6]] }
  0x15   :  { %s144_s27 = sld [smem:[#allocation2 + $0x80]] }
  0x16   :  { %s145_s28 = sld [smem:[#allocation2 + $0x81]] }
  0x17   :  { %v56_v1 = vstv %s55_s0  ;;  %s147_s2 = sld [smem:[#allocation2 + $0x82]] }
  0x18   :  { %v59_v2 = vstv %s140_s1  ;;  %v57_v3 = vmul.f32 %v56_v1, %v54_v0  ;;  %s149_s29 = sld [smem:[#allocation6 + $0x1]] }
  0x19   :  { %v60_v4 = vmul.f32 %v59_v2, %v54_v0  ;;  %v67_v5 = vstv %s142_s25 }
  0x1a   :  { %v68_v6 = vmul.f32 %v67_v5, %v54_v0  ;;  %v75_v15 = vstv %s74_s26 }
  0x1b   :  { %v141_v7 = vrot.slane %v60_v4, 9  ;;  %v79_v8 = vstv %s144_s27 }
  0x1c   :  { %v143_v9 = vrot.slane %v68_v6, 10  ;;  %v82_v10 = vstv %s145_s28  ;;  %v80_v12 = vmul.f32 %v79_v8, %v54_v0 }
  0x1d   :  { %v65_v11 = vadd.f32 %v141_v7, %v57_v3  ;;  %v83_v13 = vmul.f32 %v82_v10, %v54_v0  ;;  %v90_v14 = vstv %s147_s2 }
  0x1e   :  { %v91_v16 = vmul.f32 %v90_v14, %v54_v0  ;;  %v98_v22 = vstv %s149_s29 }
  0x1f   :  { %v73_v17 = vadd.f32 %v143_v9, %v65_v11  ;;  %v146_v18 = vrot.slane %v83_v13, 9 }
  0x20   :  { %v148_v19 = vrot.slane %v91_v16, 10 }
  0x21   :  { %v76_v20 = vadd.f32 %v75_v15, %v73_v17  ;;  %v88_v21 = vadd.f32 %v146_v18, %v80_v12 }
  0x23   :  { %v77_v23 = vmax.f32 %v76_v20, 0.0  ;;  %v96_v24 = vadd.f32 %v148_v19, %v88_v21 }
  0x25   :  { %v99_v25 = vadd.f32 %v98_v22, %v96_v24  ;;  %v102_v27 = vperm.slane %v77_v23, 0  ;;  %v103_v28 = vperm.slane %v77_v23, 4 }
  0x27   :  { %v100_v26 = vmax.f32 %v99_v25, 0.0 }
  0x29   :  { %v107_v29 = vperm.slane %v100_v26, 0  ;;  %v108_v30 = vperm.slane %v100_v26, 4 }
  0x2b   :  { %v112_v31 = vsel %vm111_vm0, %v102_v27, %v107_v29  ;;  %v113_v32 = vsel %vm111_vm0, %v103_v28, %v108_v30 }
  0x2c   :  { %v116_v33 = vrot.slane %v113_v32, 6 }
  0x2e   :  { %v118_v34 = vsel %vm117_vm1, %v112_v31, %v116_v33 }
  0x2f   :  { %120 = vst [vmem:[#allocation9] sm:$0xf] %v118_v34 }
  0x30   :  { %131 = dma.vmem_to_hbm [thread:$0]  %s127_s4, 64, %s129_s7, [#allocation4]  }
  0x31   :  { %232 = dma.done.wait [#allocation4], 64  }
  0x32   :  { %233 = vsyncadd [#allocation4], 4294967232 }
  0x33   :  { %136 = vsyncpa [#allocation3], 1 }
  0x34   :  { %137 = vsyncpa [#allocation4], 1 }
  0x35   :  { %138 = vsyncpa [#allocation5], 1 }
  0x36   :  { %139 = vsyncpa [#allocation7], 1 }

</bundles_post_ra>
